<compile_context>
chip_gen: v7x
topology: tpu7x:2x2x1
jax: 0.10.0
libtpu: 0.0.40
codegen_flags: <defaults>
</compile_context>

<pallas_src>
import jax
import jax.numpy as jnp
from jax.experimental import pallas as pl
from jax.experimental.pallas import tpu as pltpu


# ---------------------------------------------------------------------------
# Kernels: emit denom[s] = sum_c exp(logit[c, s] - max_c logit[c, s]).
# max over classes of softmax == 1/denom, so denom alone determines ranking.
# ---------------------------------------------------------------------------

def _denom_kernel_cf(x_ref, w_ref, b_ref, out_ref):
    # Channels-first tile: x_ref (1, C, tS), w_ref (NC, C), b_ref (NC, 1) f32,
    # out_ref (1, 1, tS) f32.  Token axis tS lives on lanes.
    logits = jnp.dot(w_ref[...], x_ref[0],
                     preferred_element_type=jnp.float32)          # (NC, tS) f32
    logits = logits + b_ref[...]                                  # bias bcast over lanes
    m = jnp.max(logits, axis=0, keepdims=True)                    # (1, tS) sublane reduce
    denom = jnp.sum(jnp.exp(logits - m), axis=0, keepdims=True)   # (1, tS)
    out_ref[...] = denom[None]                                    # lane-dense store


def _denom_kernel_cl(x_ref, w_ref, b_ref, out_ref):
    # Channels-last tile: x_ref (1, tS, C), w_ref (C, NC), b_ref (1, NC) f32,
    # out_ref (1, tS, 1) f32.
    logits = jnp.dot(x_ref[0], w_ref[...],
                     preferred_element_type=jnp.float32)          # (tS, NC) f32
    logits = logits + b_ref[...]
    m = jnp.max(logits, axis=-1, keepdims=True)                   # (tS, 1)
    denom = jnp.sum(jnp.exp(logits - m), axis=-1, keepdims=True)  # (tS, 1)
    # TODO(synk): lane-width-1 store here; a lane-dense relayout would need an
    # in-kernel transpose of the reduction column.  Output bytes are ~1/C of the
    # input DMA, so these stores stay hidden behind the input pipeline, and this
    # layout avoids a full-feature transpose in glue for [B,S,C] inputs.
    out_ref[...] = denom[None]


# ---------------------------------------------------------------------------
# pallas_call wrappers
# ---------------------------------------------------------------------------

def _pick_token_tile(S, C, itemsize):
    """Largest lane-aligned token tile dividing S whose double-buffered input
    block stays well inside v7x's (smaller) scoped-VMEM budget."""
    budget = 4 * 1024 * 1024   # bytes per input block (x2 for double-buffering)
    for ts in (1024, 512, 256, 128):
        if S % ts == 0 and ts * C * itemsize <= budget:
            return ts
    return S                   # small / oddly-shaped maps: one block covers S


def _denoms_cf(x_bcs, w, b):
    """x_bcs: [B, C, S] (any float dtype), w: [C, NC], b: [NC] -> denom [B, S] f32."""
    B, C, S = x_bcs.shape
    NC = w.shape[1]
    tS = _pick_token_tile(S, C, x_bcs.dtype.itemsize)
    wt = w.T.astype(x_bcs.dtype)                    # (NC, C), tiny
    b2 = b.astype(jnp.float32).reshape(NC, 1)
    out = pl.pallas_call(
        _denom_kernel_cf,
        out_shape=jax.ShapeDtypeStruct((B, 1, S), jnp.float32),
        grid_spec=pltpu.PrefetchScalarGridSpec(
            num_scalar_prefetch=0,
            grid=(B, S // tS),
            in_specs=[
                pl.BlockSpec((1, C, tS), lambda bi, si: (bi, 0, si)),
                pl.BlockSpec((NC, C), lambda bi, si: (0, 0)),
                pl.BlockSpec((NC, 1), lambda bi, si: (0, 0)),
            ],
            out_specs=pl.BlockSpec((1, 1, tS), lambda bi, si: (bi, 0, si)),
        ),
        compiler_params=pltpu.CompilerParams(
            dimension_semantics=("parallel", "parallel")),
    )(x_bcs, wt, b2)
    return out[:, 0, :]                             # (B, S)


def _denoms_cl(x_bsc, w, b):
    """x_bsc: [B, S, C] (any float dtype), w: [C, NC], b: [NC] -> denom [B, S] f32."""
    B, S, C = x_bsc.shape
    NC = w.shape[1]
    tS = _pick_token_tile(S, C, x_bsc.dtype.itemsize)
    wc = w.astype(x_bsc.dtype)
    b2 = b.astype(jnp.float32).reshape(1, NC)
    out = pl.pallas_call(
        _denom_kernel_cl,
        out_shape=jax.ShapeDtypeStruct((B, S, 1), jnp.float32),
        grid_spec=pltpu.PrefetchScalarGridSpec(
            num_scalar_prefetch=0,
            grid=(B, S // tS),
            in_specs=[
                pl.BlockSpec((1, tS, C), lambda bi, si: (bi, si, 0)),
                pl.BlockSpec((C, NC), lambda bi, si: (0, 0)),
                pl.BlockSpec((1, NC), lambda bi, si: (0, 0)),
            ],
            out_specs=pl.BlockSpec((1, tS, 1), lambda bi, si: (bi, si, 0)),
        ),
        compiler_params=pltpu.CompilerParams(
            dimension_semantics=("parallel", "parallel")),
    )(x_bsc, wc, b2)
    return out[..., 0]                              # (B, S)


# ---------------------------------------------------------------------------
# Forward pass (matches WeaklySelector.forward selections output)
# ---------------------------------------------------------------------------

def weakly_selector_forward(x, params, num_select):
    """Pallas-backed forward. x: dict of [B,C,H,W] or [B,S,C] arrays.
    Returns dict of selections [B, num_select[name], C] (same as the module)."""
    selections = {}
    for name, feat in x.items():
        w, b = params[name]
        k = num_select[name]
        if feat.ndim == 4:
            B, C, H, W = feat.shape
            feat_cf = feat.reshape(B, C, H * W)               # free reshape -> [B, C, S]
            denom = _denoms_cf(feat_cf, w, b)                 # [B, S]
            # smallest denom == largest max-softmax score; top_k over -denom.
            _, idx = jax.lax.top_k(-denom, k)                 # [B, k], descending score
            sel = jnp.take_along_axis(feat_cf, idx[:, None, :], axis=2)   # [B, C, k]
            selections[name] = jnp.transpose(sel, (0, 2, 1))  # transpose only k columns
        else:
            denom = _denoms_cl(feat, w, b)                    # [B, S]
            _, idx = jax.lax.top_k(-denom, k)                 # [B, k]
            selections[name] = jnp.take_along_axis(feat, idx[:, :, None], axis=1)
    return selections
    # TODO(synk): top-k ranking + row gather stay in plain-JAX glue
    # (lax.top_k / take_along_axis); no clean Pallas TPU sort/gather primitive.


def reference_forward(x, params, num_select):
    """Pure-JAX reference replicating the PyTorch forward semantics (classifier
    runs at the features' incoming precision with f32 accumulation, matching
    the kernel)."""
    selections = {}
    for name, feat in x.items():
        if feat.ndim == 4:
            B, C, H, W = feat.shape
            feat = jnp.transpose(feat.reshape(B, C, H * W), (0, 2, 1))   # [B, S, C]
        w, b = params[name]
        logits = jnp.dot(feat, w.astype(feat.dtype),
                         preferred_element_type=jnp.float32) + b.astype(jnp.float32)
        probs = jax.nn.softmax(logits, axis=-1)
        max_ids = jnp.max(probs, axis=-1)
        ranks = jnp.argsort(-max_ids, axis=-1)
        k = num_select[name]
        selections[name] = jnp.take_along_axis(feat, ranks[:, :k, None], axis=1)
    return selections


if __name__ == "__main__":
    key = jax.random.PRNGKey(0)
    k1, k2, k3, k4, k5, k6 = jax.random.split(key, 6)

    def _bf16_representable(a):
        # Round values to bf16-representable f32 so kernel vs. reference matmul
        # precision cannot perturb the token ranking (keeps the check exact).
        return a.astype(jnp.bfloat16).astype(jnp.float32)

    num_classes = 16
    # "layer1": 4D NCHW feature (B=2, C=32, H=W=8 -> S=64), f32 -> channels-first kernel.
    # "layer2": 3D [B, S, C] feature (B=2, S=64, C=32), bf16 -> channels-last kernel
    #           (exercises the cast-free bf16 fast path).
    x = {
        "layer1": _bf16_representable(jax.random.normal(k1, (2, 32, 8, 8), jnp.float32)),
        "layer2": jax.random.normal(k2, (2, 64, 32), jnp.float32).astype(jnp.bfloat16),
    }
    num_select = {"layer1": 8, "layer2": 16}

    # Deterministic "nn.Linear(in_size, num_classes)" parameters per name.
    params = {
        "layer1": (_bf16_representable(0.1 * jax.random.normal(k3, (32, num_classes))),
                   _bf16_representable(0.1 * jax.random.normal(k4, (num_classes,)))),
        "layer2": (_bf16_representable(0.1 * jax.random.normal(k5, (32, num_classes))),
                   _bf16_representable(0.1 * jax.random.normal(k6, (num_classes,)))),
    }

    out = weakly_selector_forward(x, params, num_select)
    out = {k: jax.block_until_ready(v) for k, v in out.items()}

    ref = reference_forward(x, params, num_select)
    for name in out:
        assert out[name].shape == (2, num_select[name], 32), (name, out[name].shape)
        assert jnp.allclose(out[name].astype(jnp.float32),
                            ref[name].astype(jnp.float32), atol=1e-5), name

    print("KERNEL_OK")
</pallas_src>

<mosaic_0001>
module attributes {stable_mosaic.version = 11 : i64} {
  func.func @_denom_kernel_cf(%arg0: i32, %arg1: i32, %arg2: memref<1x32x64xf32, #tpu.memory_space<vmem>>, %arg3: memref<16x32xf32, #tpu.memory_space<vmem>>, %arg4: memref<16x1xf32, #tpu.memory_space<vmem>>, %arg5: memref<1x1x64xf32, #tpu.memory_space<vmem>>) attributes {dimension_semantics = [#tpu.dimension_semantics<parallel>, #tpu.dimension_semantics<parallel>], iteration_bounds = array<i64: 2, 1>, scalar_prefetch = 0 : i64, scratch_operands = 0 : i64, tpu.core_type = #tpu.core_type<tc>, window_params = [{transform_indices = @transform_0, window_bounds = array<i64: 1, 32, 64>}, {pipeline_mode = #tpu.pipeline_mode<synchronous>, transform_indices = @transform_1, window_bounds = array<i64: 16, 32>}, {pipeline_mode = #tpu.pipeline_mode<synchronous>, transform_indices = @transform_2, window_bounds = array<i64: 16, 1>}, {transform_indices = @transform_3, window_bounds = array<i64: 1, 1, 64>}]} {
    %c0 = arith.constant 0 : index
    %c0_0 = arith.constant 0 : index
    %0 = vector.load %arg3[%c0, %c0_0] : memref<16x32xf32, #tpu.memory_space<vmem>>, vector<16x32xf32>
    %c0_1 = arith.constant 0 : index
    %c0_2 = arith.constant 0 : index
    %c0_3 = arith.constant 0 : index
    %1 = vector.load %arg2[%c0_1, %c0_2, %c0_3] : memref<1x32x64xf32, #tpu.memory_space<vmem>>, vector<1x32x64xf32>
    %2 = vector.shape_cast %1 : vector<1x32x64xf32> to vector<32x64xf32>
    %cst = arith.constant dense<0.000000e+00> : vector<16x64xf32>
    %3 = tpu.matmul %0, %2, %cst {dimension_numbers = #tpu.dot_dimension_numbers<[1], [0], [0], [1], [0, 0, 1, 1], [], []>} : vector<16x32xf32>, vector<32x64xf32>, vector<16x64xf32> -> vector<16x64xf32>
    %c0_4 = arith.constant 0 : index
    %c0_5 = arith.constant 0 : index
    %4 = vector.load %arg4[%c0_4, %c0_5] : memref<16x1xf32, #tpu.memory_space<vmem>>, vector<16x1xf32>
    %5 = vector.broadcast %4 : vector<16x1xf32> to vector<16x64xf32>
    %6 = arith.addf %3, %5 : vector<16x64xf32>
    %cst_6 = arith.constant dense<0xFF800000> : vector<64xf32>
    %7 = vector.multi_reduction <maximumf>, %6, %cst_6 [0] : vector<16x64xf32> to vector<64xf32>
    %8 = vector.shape_cast %7 : vector<64xf32> to vector<1x64xf32>
    %9 = vector.broadcast %8 : vector<1x64xf32> to vector<16x64xf32>
    %10 = arith.subf %6, %9 : vector<16x64xf32>
    %11 = math.exp %10 : vector<16x64xf32>
    %cst_7 = arith.constant dense<0.000000e+00> : vector<64xf32>
    %12 = vector.multi_reduction <add>, %11, %cst_7 [0] : vector<16x64xf32> to vector<64xf32>
    %13 = vector.shape_cast %12 : vector<64xf32> to vector<1x64xf32>
    %14 = vector.shape_cast %13 : vector<1x64xf32> to vector<1x1x64xf32>
    %c0_8 = arith.constant 0 : index
    %c0_9 = arith.constant 0 : index
    %c0_10 = arith.constant 0 : index
    %15 = vector.load %arg5[%c0_8, %c0_9, %c0_10] : memref<1x1x64xf32, #tpu.memory_space<vmem>>, vector<1x1x64xf32>
    tpu.vector_store %arg5[%c0_8, %c0_9, %c0_10], %14 {strides = array<i32>} : memref<1x1x64xf32, #tpu.memory_space<vmem>>, vector<1x1x64xf32>,
    return
  }
  func.func @transform_0(%arg0: i32, %arg1: i32) -> (i32, i32, i32) {
    %c0_i32 = arith.constant 0 : i32
    %c0_i32_0 = arith.constant 0 : i32
    return %arg0, %c0_i32, %arg1 : i32, i32, i32
  }
  func.func @transform_1(%arg0: i32, %arg1: i32) -> (i32, i32) {
    %c0_i32 = arith.constant 0 : i32
    %c0_i32_0 = arith.constant 0 : i32
    %c0_i32_1 = arith.constant 0 : i32
    return %c0_i32, %c0_i32_0 : i32, i32
  }
  func.func @transform_2(%arg0: i32, %arg1: i32) -> (i32, i32) {
    %c0_i32 = arith.constant 0 : i32
    %c0_i32_0 = arith.constant 0 : i32
    %c0_i32_1 = arith.constant 0 : i32
    return %c0_i32, %c0_i32_0 : i32, i32
  }
  func.func @transform_3(%arg0: i32, %arg1: i32) -> (i32, i32, i32) {
    %c0_i32 = arith.constant 0 : i32
    %c0_i32_0 = arith.constant 0 : i32
    return %arg0, %c0_i32, %arg1 : i32, i32, i32
  }
}

</mosaic_0001>

<bundles_post_ra>
// kernel: tpu_custom_call.1
= control target key start
LH: loop header
LB: loop body
LE: loop exit
PB: predicated region body
PF: predicated region fallthrough
CT: control target
= control target key end

     0   :  { %8 = vsyncpa [#allocation3], 0  ;;  %s864_s0 = inlined_call_operand.hbm [shape: f32[2,32,64], index: 0, kind: input, shape index: {}]   ;;  %s865_s1 = inlined_call_operand.vmem [shape: f32[16,32], index: 1, kind: input, shape index: {}]   ;;  %s866_s2 = inlined_call_operand.vmem [shape: f32[16,1], index: 2, kind: input, shape index: {}]   ;;  %s867_s3 = inlined_call_operand.hbm [shape: f32[2,1,64], index: 3, kind: output, shape index: {}]  }
   0x1   :  { %10 = vsyncpa [#allocation3 + $0x1], 0 }
   0x2   :  { %11 = vsyncpa [#allocation4], 0 }
   0x3   :  { %13 = vsyncpa [#allocation4 + $0x1], 0  ;;  %s672_s12 = smov 0   ;;  %s674_s13 = smov 0  }
   0x4   :  { %s676_s14 = smov 0   ;;  %s678_s15 = smov 0  }
   0x5   :  { %s680_s16 = smov 0   ;;  %s682_s17 = smov 0  }
   0x6 LB: > { %s423_s18 = sadd.s32 4294967295, %s645_s17   ;;  %s424_s19 = sadd.s32 4294967294, %s645_s17   ;;  %s645_s17 = sphi %s682_s17, %s19_s17   ;;  %s641_s16 = sphi %s680_s16, %s882_s16   ;;  %s637_s15 = sphi %s678_s15, %s881_s15   ;;  %s633_s14 = sphi %s676_s14, %s880_s14   ;;  %s629_s13 = sphi %s674_s13, %s879_s13   ;;  %s625_s12 = sphi %s672_s12, %s878_s12  }
   0x7   : > { %s31_s20 = sadd.s32 1, %s641_s16  ;;  %s40_s21 = sadd.s32 1, %s633_s14 }
   0x8   : > { %p33_p0 = scmp.ge.s32.totalorder %s31_s20, 2  ;;  %p47_p1 = scmp.ne.s32.totalorder %s633_s14, %s629_s13 }
   0x9   : > { %p48_p2 = scmp.eq.s32.totalorder %s645_s17, 0  ;;  %p53_p3 = scmp.ne.s32.totalorder %s629_s13, %s625_s12 }
   0xa   : > { %s884_s20 = smov (%p33_p0, %s31_s20), 0  ;;  %p54_p5 = scmp.eq.s32.totalorder %s423_s18, 0 }
   0xb   : > { %p713_p4 = por %p48_p2, %p47_p1  ;;  %s35_s23 = ssub.s32 %s641_s16, %s884_s20 }
   0xc   : > { %p121_p6 = scmp.eq.s32.totalorder %s423_s18, 1  ;;  %p38_p7 = scmp.eq.s32.totalorder %s35_s23, 0 }
   0xd   : > { %p719_p8 = por %p54_p5, %p53_p3  ;;  %p127_p10 = scmp.eq.s32.totalorder %s424_s19, 1 }
   0xe   : > { %p723_p9 = por %p121_p6, %p47_p1  ;;  %p475_p13 = scmp.lt.s32.totalorder %s645_s17, 2 }
   0xf   : > { %s728_s26 = scalar_select %p38_p7, %s633_s14, %s40_s21  }
  0x10   : > { %s871_s25 = scalar_select %p723_p9, 1, 0 }
  0x11   : > { %p730_p11 = por %p127_p10, %p53_p3  ;;  %s153_s28 = sand.u32 1, %s633_s14  }
  0x12   : > { %s427_s29 = sshll.u32 %s153_s28, 5  ;;  %s437_s30 = sshll.u32 %s641_s16, 9 }
  0x13   : > { %s872_s27 = scalar_select %p730_p11, 1, 0 }
  0x14   : > { %s741_s6 = scalar_lea.hbm %s864_s0, %s437_s30  ;;  %s157_s7 = scalar_lea.vmem [#allocation2], %s427_s29 }
  0x15   : > { %s165_s8 = sshll.u32 %s157_s7, 4  ;;  %p747_p0 = pnand %p475_p13, %p713_p4  ;;  %s743_s8 = int_to_ptr.vmem [resolvable:$true] %s165_s8 }
  0x16   : > { %s752_s10 = scalar_lea.sflag [#allocation3], %s153_s28  ;;  %s533_s11 = scalar_lea.hbm %s741_s6, 512 }
  0x17   : > { %p534_p2 = scmp.ne.s32.totalorder %s741_s6, %s533_s11  ;;  %p535_p3 = pneg %p747_p0 }
  0x18   : > { %s538_s21 = scalar_lea.hbm %s864_s0, 1024  ;;  %p539_p4 = scmp.lt.u32.totalorder %s741_s6, %s864_s0 }
  0x19   : > { %p536_p5 = pnand %p535_p3, %p534_p2  ;;  %p540_p7 = scmp.lt.u32.totalorder %s538_s21, %s533_s11 }
  0x1a   : > { %p542_p13 = scmp.lt.u32.totalorder %s533_s11, %s741_s6 }
  0x1b   : > { %p537_p6 = pneg %p536_p5  ;;  %p541_p10 = por %p540_p7, %p539_p4 }
  0x1d   : > { %p543_p12 = por %p542_p13, %p541_p10 }
  0x1f   : > { %p544_p1 = pnand %p543_p12, %p537_p6 }
  0x21   : > { %547 = shalt.err (!%p544_p1)
}
  0x22   : > { %s548_s28 = scalar_lea.vmem %s743_s8, 512  ;;  %s647_s29 = smov [#allocation2]  }
  0x23   : > { %p549_p2 = scmp.ne.s32.totalorder %s743_s8, %s548_s28  ;;  %s553_s30 = sshll.u32 %s647_s29, 4  ;;  %s554_s30 = int_to_ptr.vmem [resolvable:$false] %s553_s30 }
  0x24   : > { %s555_s4 = scalar_lea.vmem %s554_s30, 1024  ;;  %p556_p9 = scmp.lt.s32.totalorder %s743_s8, %s554_s30 }
  0x25   : > { %p551_p5 = pnand %p549_p2, %p535_p3  ;;  %p557_p4 = scmp.lt.s32.totalorder %s555_s4, %s548_s28 }
  0x27   : > { %p552_p11 = pneg %p551_p5  ;;  %p558_p7 = por %p557_p4, %p556_p9 }
  0x29   : > { %p559_p10 = pnand %p558_p7, %p552_p11 }
  0x2b   : > { %562 = shalt.err (!%p559_p10)
}
  0x2c   : > { %s648_s5 = smov 128   ;;  %s649_s7 = smov 8  }
  0x2d   : > { %470 = dma.hbm_to_vmem [thread:$0]  (!%p747_p0), %s741_s6, 512, %s743_s8, %s752_s10, %s648_s5, %s648_s5, %s649_s7  }
  0x2e   : > { %p173_p12 = scmp.lt.s32.totalorder %s645_s17, 3  ;;  %p874_p1 = scmp.ge.s32.totalorder %s645_s17, 1 }
  0x30   : > { %p174_p3 = pnand %p874_p1, %p173_p12 }
  0x31   : > { %s784_s11 = sand.u32 (!%p174_p3), 1, %s629_s13  }
  0x32   : > { %177 = sbr.rel (%p174_p3) target bundleno = 344 (0x158), region = 32  ;;  %s431_s18 = sshll.u32 (!%p174_p3), %s784_s11, 5 }
  0x33   : > { %s180_s19 = scalar_lea.sflag (!%p174_p3), [#allocation3], %s784_s11  ;;  %s183_s21 = scalar_lea.vmem (!%p174_p3), [#allocation2], %s431_s18 }
  0x39   : > { %616 = dma.done.wait (%p719_p8), %s180_s19, 512  }
  0x3a   : > { %618 = vsyncadd (%p719_p8), %s180_s19, 4294966784  ;;  %v650_v0 = vmov 0   ;;  %vm223_vm0 = vcmask 261120   ;;  %v207_v1 = vld [vmem:[%s183_s21] sm:$0xff]  ;;  %v208_v2 = vld [vmem:[%s183_s21 + $0x8] sm:$0xff]  ;;  %vm305_vm1 = vcmask 523264  }
  0x3b   : > { %528 = vset.pattern.permute.xlu0 %v650_v0  ;;  %v209_v3 = vld [vmem:[%s183_s21 + $0x10] sm:$0xff]  ;;  %v455_v4 = vpack.c.bf16 %v208_v2, %v207_v1  ;;  %v210_v5 = vld [vmem:[%s183_s21 + $0x18] sm:$0xff]  ;;  %v205_v6 = vld [vmem:[%s865_s1] sm:$0xff]  ;;  %s434_s29 = sshll.u32 %s637_s15, 4  ;;  %s204_s30 = scalar_lea.vmem [#allocation5], %s784_s11  ;;  %vm330_vm2 = vcmask 516096  }
  0x3c   : > { %v459_v7 = vpack.c.bf16 %v210_v5, %v209_v3  ;;  %452 = vmatprep.mubr.msk.f32.mxu0 %vm223_vm0, %v205_v6  ;;  %v211_v8 = vld [vmem:[%s866_s2] sm:$0xff]  ;;  %v212_v9 = vld [vmem:[%s866_s2 + $0x8] sm:$0xff]  ;;  %s346_s4 = sshll.u32 %s204_s30, 4  ;;  %s815_s18 = scalar_lea.hbm %s867_s3, %s434_s29  ;;  %s817_s4 = int_to_ptr.vmem [resolvable:$true] %s346_s4 }
  0x3d   : > { %456 = vmatprep.subr.bf16.mxu0 %v455_v4  ;;  %215 = vperm.xlu0 %528, %v211_v8   ;;  %v206_v10 = vld [vmem:[%s865_s1 + $0x8] sm:$0xff]  ;;  %s333_s19 = scalar_lea.sflag [#allocation4], %s784_s11  ;;  %s563_s21 = scalar_lea.vmem %s817_s4, 16 }
  0x3e   : > { %458 = vmatpush3.bf16.msra.mxu0 %v455_v4  ;;  %p564_p8 = scmp.ne.s32.totalorder %s817_s4, %s563_s21  ;;  %p875_p9 = scmp.ne.s32.totalorder %s871_s25, 0 }
  0x3f   : > { %460 = vmatprep.subr.bf16.mxu0 %v459_v7  ;;  %s651_s15 = smov [#allocation5]  }
  0x40   : > { %p565_p11 = pnand %p564_p8, %p875_p9  ;;  %s567_s6 = sshll.u32 %s651_s15, 4  ;;  %s568_s6 = int_to_ptr.vmem [resolvable:$false] %s567_s6 }
  0x41   : > { %220 = vperm.xlu0 %528, %v212_v9   ;;  %s569_s8 = scalar_lea.vmem %s568_s6, 32  ;;  %p570_p6 = scmp.lt.s32.totalorder %s817_s4, %s568_s6 }
  0x42   : > { %462 = vmatpush3.bf16.msra.mxu0 %v459_v7  ;;  %p566_p0 = pneg %p565_p11  ;;  %p571_p13 = scmp.lt.s32.totalorder %s569_s8, %s563_s21 }
  0x44   : > { %p572_p2 = por %p571_p13, %p570_p6 }
  0x45   : > { %453 = vmatmul.mubr.msk.f32.vlgmr.msra.gmra.mrb[0].mxu0 %vm223_vm0, %v206_v10 }
  0x46   : > { %p573_p5 = pnand %p572_p2, %p566_p0 }
  0xbc   : > { %v216_v11 = vpop.permute.xlu0 %215 }
  0xc0   : > { %v221_v12 = vpop.permute.xlu0 %220 }
 0x118   : > { %v454_v13 = vpop.f32.mrb[0].mxu0 }
 0x119   : > { %v302_v14 = vadd.f32 %v454_v13, %v221_v12  ;;  %v296_v15 = vpop.f32.mrb[1].mxu0 }
 0x11a   : > { %v297_v16 = vadd.f32 %v296_v15, %v216_v11 }
 0x11b   : > { %v307_v17 = vsel %vm305_vm1, %v302_v14, -inf }
 0x11c   : > { %v306_v18 = vsel %vm305_vm1, %v297_v16, -inf }
 0x11d   : > { %v308_v19 = vmax.f32 %v306_v18, %v307_v17 }
 0x11f   : > { %v309_v20 = vrot.slane %v308_v19, 4 }
 0x121   : > { %v310_v21 = vmax.f32 %v308_v19, %v309_v20 }
 0x123   : > { %v311_v22 = vrot.slane %v310_v21, 2 }
 0x125   : > { %v312_v23 = vmax.f32 %v310_v21, %v311_v22 }
 0x127   : > { %v313_v24 = vrot.slane %v312_v23, 1 }
 0x129   : > { %v314_v25 = vmax.f32 %v312_v23, %v313_v24 }
 0x12b   : > { %v315_v26 = vsub.f32 %v297_v16, %v314_v25  ;;  %v316_v27 = vsub.f32 %v302_v14, %v314_v25 }
 0x12d   : > { %v317_v28 = vmul.f32 1.442695, %v315_v26  ;;  %v319_v29 = vmul.f32 1.442695, %v316_v27 }
 0x12f   : > { %529 = vpow2.f32 %v317_v28 }
 0x130   : > { %531 = vpow2.f32 %v319_v29 }
 0x139   : > { %v530_v30 = vpop.eup %529 }
 0x13a   : > { %v532_v31 = vpop.eup %531  ;;  %v321_v32 = vsel %vm305_vm1, %v530_v30, 0.0 }
 0x13b   : > { %v322_v33 = vsel %vm305_vm1, %v532_v31, 0.0 }
 0x13c   : > { %v323_v34 = vadd.f32 %v322_v33, %v321_v32 }
 0x13e   : > { %v324_v35 = vrot.slane %v323_v34, 4 }
 0x140   : > { %v325_v36 = vadd.f32 %v324_v35, %v323_v34 }
 0x142   : > { %v326_v37 = vrot.slane %v325_v36, 2 }
 0x144   : > { %v327_v38 = vadd.f32 %v326_v37, %v325_v36 }
 0x146   : > { %v328_v39 = vrot.slane %v327_v38, 1 }
 0x148   : > { %v329_v40 = vadd.f32 %v328_v39, %v327_v38 }
 0x14a   : > { %331 = vst.msk [vmem:[%s204_s30] sm:$0x1] %vm330_vm2, %v329_v40 }
 0x14b   : > { %576 = shalt.err (!%p573_p5)
}
 0x14c   : > { %s577_s11 = scalar_lea.hbm %s815_s18, 16  ;;  %s581_s24 = scalar_lea.hbm %s867_s3, 32 }
 0x14d   : > { %p578_p4 = scmp.ne.s32.totalorder %s815_s18, %s577_s11  ;;  %p582_p12 = scmp.lt.u32.totalorder %s815_s18, %s867_s3 }
 0x14e   : > { %p583_p1 = scmp.lt.u32.totalorder %s581_s24, %s577_s11  ;;  %p585_p8 = scmp.lt.u32.totalorder %s577_s11, %s815_s18 }
 0x14f   : > { %p579_p7 = pnand %p578_p4, %p875_p9 }
 0x150   : > { %p584_p3 = por %p583_p1, %p582_p12 }
 0x151   : > { %p580_p10 = pneg %p579_p7 }
 0x152   : > { %p586_p11 = por %p585_p8, %p584_p3 }
 0x154   : > { %p587_p0 = pnand %p586_p11, %p580_p10 }
 0x156   : > { %590 = shalt.err (!%p587_p0)
}
 0x157   : > { %465 = dma.vmem_to_hbm [thread:$0]  (%p875_p9), %s817_s4, 16, %s815_s18, %s333_s19  }
 0x158 PF: > { %s358_s28 = sand.u32 1, %s625_s12   ;;  %p876_p6 = scmp.ne.s32.totalorder %s872_s27, 0 }
 0x159   : > { %p877_p13 = scmp.ge.s32.totalorder %s645_s17, 2  ;;  %s359_s29 = scalar_lea.sflag [#allocation4], %s358_s28 }
 0x15b   : > { %p472_p2 = pnand %p877_p13, %p876_p6 }
 0x15d   : > { %620 = dma.done.wait (!%p472_p2), %s359_s29, 16  }
 0x15e   : > { %622 = vsyncadd (!%p472_p2), %s359_s29, 4294967280  ;;  %s19_s17 = sadd.s32 1, %s645_s17   ;;  %s878_s12 = smov %s629_s13 }
 0x15f   : > { %p16_p5 = scmp.ge.s32.totalorder %s19_s17, 4   ;;  %s879_s13 = smov %s633_s14 }
 0x160   : > { %s880_s14 = smov %s728_s26  ;;  %s881_s15 = smov %s641_s16 }
 0x161   : > { %s882_s16 = smov %s884_s20  ;;  %18 = sbr.rel (!%p16_p5) target bundleno = 6 (0x6), region = 77 }
 0x168   :  { %363 = vsyncpa [#allocation3], 1 }
 0x169   :  { %365 = vsyncpa [#allocation3 + $0x1], 1 }
 0x16a   :  { %366 = vsyncpa [#allocation4], 1 }
 0x16b   :  { %368 = vsyncpa [#allocation4 + $0x1], 1 }

</bundles_post_ra>
